<compile_context>
chip_gen: v6e
topology: v6e:2x2x1
jax: 0.10.0
libtpu: 0.0.40
codegen_flags: <defaults>
</compile_context>

<pallas_src>
import functools

import jax
import jax.numpy as jnp
import numpy as np
from jax.experimental import pallas as pl
from jax.experimental.pallas import tpu as pltpu


def _ada_ln_zero_kernel(x_ref,      # VMEM  (Bt, TN, D)   input activations tile
                        emb_ref,    # VMEM  (Bt, D)       conditioning embedding
                        w_ref,      # VMEM  (D, 6D)       Linear weight (pre-transposed)
                        bias_ref,   # VMEM  (1, 6D)       Linear bias
                        xo_ref,     # VMEM  (Bt, TN, D)   modulated output tile
                        emb6_ref,   # VMEM  (Bt, 6D)      projected conditioning (resident over j)
                        *, dim, eps):
    j = pl.program_id(1)

    # --- conditioning projection: silu(emb) @ W + b, computed once per batch chunk ---
    @pl.when(j == 0)
    def _():
        e = emb_ref[...].astype(jnp.float32)                       # (Bt, D)
        se = e * jax.nn.sigmoid(e)                                 # SiLU (VPU + EUP)
        emb6 = jnp.dot(se, w_ref[...].astype(jnp.float32),
                       preferred_element_type=jnp.float32)
        emb6 = emb6 + bias_ref[...].astype(jnp.float32)            # (Bt, 6D)
        emb6_ref[...] = emb6.astype(emb6_ref.dtype)                # stays resident across j

    # --- LayerNorm (no affine, eps) on this sequence tile, in f32 ---
    x = x_ref[...].astype(jnp.float32)                             # (Bt, TN, D)
    mu = jnp.mean(x, axis=-1, keepdims=True)
    xc = x - mu
    var = jnp.mean(xc * xc, axis=-1, keepdims=True)
    xn = xc * jax.lax.rsqrt(var + eps)

    # --- AdaLN-Zero modulation with shift_msa / scale_msa from the resident slab ---
    shift = emb6_ref[:, 0:dim].astype(jnp.float32)                 # (Bt, D)
    scale = emb6_ref[:, dim:2 * dim].astype(jnp.float32)           # (Bt, D)
    xo_ref[...] = (xn * (1.0 + scale[:, None, :])
                   + shift[:, None, :]).astype(xo_ref.dtype)


def ada_layer_norm_zero(x, emb, w, b, *, eps=1e-6,
                        seq_block=None, batch_block=None):
    """x: (B, N, D), emb: (B, D), w: (D, 6D)  (= torch weight.T), b: (6D,)
    Returns (x_mod, gate_msa, shift_mlp, scale_mlp, gate_mlp)."""
    B, N, D = x.shape
    assert emb.shape == (B, D)
    assert w.shape == (D, 6 * D)
    assert b.shape == (6 * D,)

    # --- tile sizes: as large as sensibly fits; toy shapes -> one big block ---
    if batch_block is None:
        batch_block = B if B <= 8 else (8 if B % 8 == 0 else 1)
    if seq_block is None:
        if N <= 256:
            seq_block = N
        else:
            seq_block = N
            for cand in range(256, 0, -8):
                if N % cand == 0:
                    seq_block = cand
                    break
    assert B % batch_block == 0 and N % seq_block == 0

    nb = B // batch_block
    nj = N // seq_block
    bias2d = b.reshape(1, 6 * D)

    kernel = functools.partial(_ada_ln_zero_kernel, dim=D, eps=eps)

    x_out, emb6 = pl.pallas_call(
        kernel,
        grid=(nb, nj),
        in_specs=[
            pl.BlockSpec((batch_block, seq_block, D), lambda bi, j: (bi, j, 0)),  # x
            pl.BlockSpec((batch_block, D),            lambda bi, j: (bi, 0)),     # emb
            pl.BlockSpec((D, 6 * D),                  lambda bi, j: (0, 0)),      # W  (constant)
            pl.BlockSpec((1, 6 * D),                  lambda bi, j: (0, 0)),      # b  (constant)
        ],
        out_specs=[
            pl.BlockSpec((batch_block, seq_block, D), lambda bi, j: (bi, j, 0)),  # x_out
            pl.BlockSpec((batch_block, 6 * D),        lambda bi, j: (bi, 0)),     # emb6 (resident over j)
        ],
        out_shape=[
            jax.ShapeDtypeStruct((B, N, D), x.dtype),
            jax.ShapeDtypeStruct((B, 6 * D), emb.dtype),
        ],
        compiler_params=pltpu.CompilerParams(
            dimension_semantics=("parallel", "arbitrary")),
    )(x, emb, w, bias2d)

    # torch.chunk(emb6, 6, dim=1): chunks 0/1 (shift_msa/scale_msa) were consumed
    # inside the kernel; return the remaining four as cheap slices of the slab.
    gate_msa  = emb6[:, 2 * D:3 * D]
    shift_mlp = emb6[:, 3 * D:4 * D]
    scale_mlp = emb6[:, 4 * D:5 * D]
    gate_mlp  = emb6[:, 5 * D:6 * D]
    return x_out, gate_msa, shift_mlp, scale_mlp, gate_mlp


def _reference(x, emb, w, b, eps=1e-6):
    """Pure-JAX reference matching the PyTorch module semantics."""
    D = x.shape[-1]
    e = emb * jax.nn.sigmoid(emb)
    emb6 = jnp.dot(e, w, precision=jax.lax.Precision.HIGHEST) + b
    shift_msa, scale_msa, gate_msa, shift_mlp, scale_mlp, gate_mlp = jnp.split(emb6, 6, axis=-1)
    mu = x.mean(-1, keepdims=True)
    var = ((x - mu) ** 2).mean(-1, keepdims=True)
    xn = (x - mu) / jnp.sqrt(var + eps)
    xo = xn * (1.0 + scale_msa[:, None, :]) + shift_msa[:, None, :]
    return xo, gate_msa, shift_mlp, scale_mlp, gate_mlp


if __name__ == "__main__":
    B, N, D = 2, 16, 32   # batch, seq, hidden (dim)

    key = jax.random.PRNGKey(0)
    kx, ke, kw, kb = jax.random.split(key, 4)
    x = jax.random.normal(kx, (B, N, D), dtype=jnp.float32)
    emb = jax.random.normal(ke, (B, D), dtype=jnp.float32)
    # nn.Linear(dim, 6*dim): store weight already transposed as (D, 6D)
    w = jax.random.normal(kw, (D, 6 * D), dtype=jnp.float32) * (1.0 / np.sqrt(D))
    b = jax.random.normal(kb, (6 * D,), dtype=jnp.float32) * 0.1

    outs = ada_layer_norm_zero(x, emb, w, b)
    outs = jax.block_until_ready(outs)

    refs = jax.block_until_ready(_reference(x, emb, w, b))

    assert outs[0].shape == (B, N, D)
    for o, r in zip(outs, refs):
        np.testing.assert_allclose(np.asarray(o), np.asarray(r), rtol=1e-4, atol=1e-4)
    print("KERNEL_OK")
</pallas_src>

<mosaic_0001>
module attributes {stable_mosaic.version = 11 : i64} {
  func.func @_ada_ln_zero_kernel(%arg0: i32, %arg1: i32, %arg2: memref<2x16x32xf32, #tpu.memory_space<vmem>>, %arg3: memref<2x32xf32, #tpu.memory_space<vmem>>, %arg4: memref<32x192xf32, #tpu.memory_space<vmem>>, %arg5: memref<1x192xf32, #tpu.memory_space<vmem>>, %arg6: memref<2x16x32xf32, #tpu.memory_space<vmem>>, %arg7: memref<2x192xf32, #tpu.memory_space<vmem>>) attributes {dimension_semantics = [#tpu.dimension_semantics<parallel>, #tpu.dimension_semantics<arbitrary>], iteration_bounds = array<i64: 1, 1>, scalar_prefetch = 0 : i64, scratch_operands = 0 : i64, tpu.core_type = #tpu.core_type<tc>, window_params = [{transform_indices = @transform_0, window_bounds = array<i64: 2, 16, 32>}, {transform_indices = @transform_1, window_bounds = array<i64: 2, 32>}, {pipeline_mode = #tpu.pipeline_mode<synchronous>, transform_indices = @transform_2, window_bounds = array<i64: 32, 192>}, {pipeline_mode = #tpu.pipeline_mode<synchronous>, transform_indices = @transform_3, window_bounds = array<i64: 1, 192>}, {transform_indices = @transform_4, window_bounds = array<i64: 2, 16, 32>}, {transform_indices = @transform_5, window_bounds = array<i64: 2, 192>}]} {
    %c0_i32 = arith.constant 0 : i32
    %0 = arith.cmpi eq, %arg1, %c0_i32 : i32
    %1 = arith.extui %0 : i1 to i32
    %c0_i32_0 = arith.constant 0 : i32
    %2 = arith.cmpi ne, %1, %c0_i32_0 : i32
    scf.if %2 {
      %c0_14 = arith.constant 0 : index
      %c0_15 = arith.constant 0 : index
      %31 = vector.load %arg3[%c0_14, %c0_15] : memref<2x32xf32, #tpu.memory_space<vmem>>, vector<2x32xf32>
      %32 = arith.negf %31 : vector<2x32xf32>
      %33 = math.exp %32 : vector<2x32xf32>
      %cst_16 = arith.constant 1.000000e+00 : f32
      %34 = vector.broadcast %cst_16 : f32 to vector<2x32xf32>
      %35 = arith.addf %34, %33 : vector<2x32xf32>
      %36 = arith.divf %34, %35 : vector<2x32xf32>
      %37 = arith.mulf %31, %36 : vector<2x32xf32>
      %c0_17 = arith.constant 0 : index
      %c0_18 = arith.constant 0 : index
      %38 = vector.load %arg4[%c0_17, %c0_18] : memref<32x192xf32, #tpu.memory_space<vmem>>, vector<32x192xf32>
      %cst_19 = arith.constant dense<0.000000e+00> : vector<2x192xf32>
      %39 = tpu.matmul %37, %38, %cst_19 {dimension_numbers = #tpu.dot_dimension_numbers<[1], [0], [0], [1], [0, 0, 1, 1], [], []>} : vector<2x32xf32>, vector<32x192xf32>, vector<2x192xf32> -> vector<2x192xf32>
      %c0_20 = arith.constant 0 : index
      %c0_21 = arith.constant 0 : index
      %40 = vector.load %arg5[%c0_20, %c0_21] : memref<1x192xf32, #tpu.memory_space<vmem>>, vector<1x192xf32>
      %41 = vector.broadcast %40 : vector<1x192xf32> to vector<2x192xf32>
      %42 = arith.addf %39, %41 : vector<2x192xf32>
      %c0_22 = arith.constant 0 : index
      %c0_23 = arith.constant 0 : index
      %43 = vector.load %arg7[%c0_22, %c0_23] : memref<2x192xf32, #tpu.memory_space<vmem>>, vector<2x192xf32>
      tpu.vector_store %arg7[%c0_22, %c0_23], %42 {strides = array<i32>} : memref<2x192xf32, #tpu.memory_space<vmem>>, vector<2x192xf32>,
    } else {
    }
    %c0 = arith.constant 0 : index
    %c0_1 = arith.constant 0 : index
    %c0_2 = arith.constant 0 : index
    %3 = vector.load %arg2[%c0, %c0_1, %c0_2] : memref<2x16x32xf32, #tpu.memory_space<vmem>>, vector<2x16x32xf32>
    %cst = arith.constant dense<0.000000e+00> : vector<2x16xf32>
    %4 = vector.multi_reduction <add>, %3, %cst [2] : vector<2x16x32xf32> to vector<2x16xf32>
    %5 = vector.shape_cast %4 : vector<2x16xf32> to vector<2x16x1xf32>
    %cst_3 = arith.constant 3.200000e+01 : f32
    %6 = vector.broadcast %cst_3 : f32 to vector<2x16x1xf32>
    %7 = arith.divf %5, %6 : vector<2x16x1xf32>
    %8 = vector.broadcast %7 : vector<2x16x1xf32> to vector<2x16x32xf32>
    %9 = arith.subf %3, %8 : vector<2x16x32xf32>
    %10 = arith.mulf %9, %9 : vector<2x16x32xf32>
    %cst_4 = arith.constant dense<0.000000e+00> : vector<2x16xf32>
    %11 = vector.multi_reduction <add>, %10, %cst_4 [2] : vector<2x16x32xf32> to vector<2x16xf32>
    %12 = vector.shape_cast %11 : vector<2x16xf32> to vector<2x16x1xf32>
    %cst_5 = arith.constant 3.200000e+01 : f32
    %13 = vector.broadcast %cst_5 : f32 to vector<2x16x1xf32>
    %14 = arith.divf %12, %13 : vector<2x16x1xf32>
    %cst_6 = arith.constant 9.99999997E-7 : f32
    %15 = vector.broadcast %cst_6 : f32 to vector<2x16x1xf32>
    %16 = arith.addf %14, %15 : vector<2x16x1xf32>
    %17 = math.rsqrt %16 : vector<2x16x1xf32>
    %18 = vector.broadcast %17 : vector<2x16x1xf32> to vector<2x16x32xf32>
    %19 = arith.mulf %9, %18 : vector<2x16x32xf32>
    %c0_7 = arith.constant 0 : index
    %c0_8 = arith.constant 0 : index
    %20 = vector.load %arg7[%c0_7, %c0_8] : memref<2x192xf32, #tpu.memory_space<vmem>>, vector<2x32xf32>
    %c0_9 = arith.constant 0 : index
    %c32 = arith.constant 32 : index
    %21 = vector.load %arg7[%c0_9, %c32] : memref<2x192xf32, #tpu.memory_space<vmem>>, vector<2x32xf32>
    %22 = vector.shape_cast %21 : vector<2x32xf32> to vector<2x1x32xf32>
    %cst_10 = arith.constant 1.000000e+00 : f32
    %23 = vector.broadcast %cst_10 : f32 to vector<2x1x32xf32>
    %24 = arith.addf %23, %22 : vector<2x1x32xf32>
    %25 = vector.broadcast %24 : vector<2x1x32xf32> to vector<2x16x32xf32>
    %26 = arith.mulf %19, %25 : vector<2x16x32xf32>
    %27 = vector.shape_cast %20 : vector<2x32xf32> to vector<2x1x32xf32>
    %28 = vector.broadcast %27 : vector<2x1x32xf32> to vector<2x16x32xf32>
    %29 = arith.addf %26, %28 : vector<2x16x32xf32>
    %c0_11 = arith.constant 0 : index
    %c0_12 = arith.constant 0 : index
    %c0_13 = arith.constant 0 : index
    %30 = vector.load %arg6[%c0_11, %c0_12, %c0_13] : memref<2x16x32xf32, #tpu.memory_space<vmem>>, vector<2x16x32xf32>
    tpu.vector_store %arg6[%c0_11, %c0_12, %c0_13], %29 {strides = array<i32>} : memref<2x16x32xf32, #tpu.memory_space<vmem>>, vector<2x16x32xf32>,
    return
  }
  func.func @transform_0(%arg0: i32, %arg1: i32) -> (i32, i32, i32) {
    %c0_i32 = arith.constant 0 : i32
    %c0_i32_0 = arith.constant 0 : i32
    return %arg0, %arg1, %c0_i32 : i32, i32, i32
  }
  func.func @transform_1(%arg0: i32, %arg1: i32) -> (i32, i32) {
    %c0_i32 = arith.constant 0 : i32
    %c0_i32_0 = arith.constant 0 : i32
    return %arg0, %c0_i32 : i32, i32
  }
  func.func @transform_2(%arg0: i32, %arg1: i32) -> (i32, i32) {
    %c0_i32 = arith.constant 0 : i32
    %c0_i32_0 = arith.constant 0 : i32
    %c0_i32_1 = arith.constant 0 : i32
    return %c0_i32, %c0_i32_0 : i32, i32
  }
  func.func @transform_3(%arg0: i32, %arg1: i32) -> (i32, i32) {
    %c0_i32 = arith.constant 0 : i32
    %c0_i32_0 = arith.constant 0 : i32
    %c0_i32_1 = arith.constant 0 : i32
    return %c0_i32, %c0_i32_0 : i32, i32
  }
  func.func @transform_4(%arg0: i32, %arg1: i32) -> (i32, i32, i32) {
    %c0_i32 = arith.constant 0 : i32
    %c0_i32_0 = arith.constant 0 : i32
    return %arg0, %arg1, %c0_i32 : i32, i32, i32
  }
  func.func @transform_5(%arg0: i32, %arg1: i32) -> (i32, i32) {
    %c0_i32 = arith.constant 0 : i32
    %c0_i32_0 = arith.constant 0 : i32
    return %arg0, %c0_i32 : i32, i32
  }
}

</mosaic_0001>

<bundles_post_ra>
// kernel: tpu_custom_call.1
= control target key start
LH: loop header
LB: loop body
LE: loop exit
PB: predicated region body
PF: predicated region fallthrough
CT: control target
= control target key end

     0   :  { %11 = vsyncpa [#allocation3], 0  ;;  %s565_s0 = inlined_call_operand.hbm [shape: f32[2,16,32], index: 0, kind: input, shape index: {}]   ;;  %s566_s1 = inlined_call_operand.hbm [shape: f32[2,32], index: 1, kind: input, shape index: {}]   ;;  %s567_s2 = inlined_call_operand.hbm [shape: f32[32,192], index: 2, kind: input, shape index: {}]   ;;  %s568_s3 = inlined_call_operand.vmem [shape: f32[1,192], index: 3, kind: input, shape index: {}]   ;;  %s569_s4 = inlined_call_operand.hbm [shape: f32[2,16,32], index: 4, kind: output, shape index: {0}]   ;;  %s570_s5 = inlined_call_operand.hbm [shape: f32[2,192], index: 5, kind: output, shape index: {1}]  }
   0x1   :  { %12 = vsyncpa [#allocation6], 0 }
   0x2   :  { %13 = vsyncpa [#allocation4], 0 }
   0x3   :  { %14 = vsyncpa [#allocation10], 0  ;;  %s459_s18 = smov [#allocation5]   ;;  %s460_s20 = smov [#allocation2]  }
   0x4   :  { %s33_s19 = sshll.u32 %s459_s18, 4  ;;  %s20_s21 = sshll.u32 %s460_s20, 4  ;;  %s34_s19 = int_to_ptr.vmem [resolvable:$true] %s33_s19  ;;  %s21_s21 = int_to_ptr.vmem [resolvable:$true] %s20_s21 }
   0x5   :  { %s359_s22 = scalar_lea.vmem %s34_s19, 32  ;;  %p364_p1 = scmp.lt.s32.totalorder %s34_s19, %s34_s19 }
   0x6   :  { %p360_p0 = scmp.ne.s32.totalorder %s34_s19, %s359_s22  ;;  %p365_p2 = scmp.lt.s32.totalorder %s359_s22, %s359_s22 }
   0x8   :  { %p366_p3 = por %p365_p2, %p364_p1 }
   0xa   :  { %p367_p4 = pnand %p366_p3, %p360_p0 }
   0xc   :  { %370 = shalt.err (!%p367_p4)
}
   0xd   :  { %36 = dma.hbm_to_vmem [thread:$0]  %s566_s1, 32, %s34_s19, [#allocation6]  }
   0xe   :  { %s379_s25 = scalar_lea.vmem %s21_s21, 512  ;;  %p384_p6 = scmp.lt.s32.totalorder %s21_s21, %s21_s21 }
   0xf   :  { %p380_p5 = scmp.ne.s32.totalorder %s21_s21, %s379_s25  ;;  %p385_p7 = scmp.lt.s32.totalorder %s379_s25, %s379_s25 }
  0x11   :  { %p386_p8 = por %p385_p7, %p384_p6 }
  0x13   :  { %p387_p9 = pnand %p386_p8, %p380_p5 }
  0x15   :  { %390 = shalt.err (!%p387_p9)
}
  0x16   :  { %s461_s26 = smov 128   ;;  %s462_s27 = smov 8  }
  0x17   :  { %26 = dma.hbm_to_vmem [thread:$0]  %s565_s0, 512, %s21_s21, [#allocation3], %s461_s26, %s461_s26, %s462_s27  }
  0x18   :  { %s463_s30 = smov [#allocation7]  }
  0x19   :  { %s42_s6 = sshll.u32 %s463_s30, 4  ;;  %s43_s6 = int_to_ptr.vmem [resolvable:$true] %s42_s6 }
  0x1a   :  { %s399_s1 = scalar_lea.vmem %s43_s6, 1024  ;;  %p404_p11 = scmp.lt.s32.totalorder %s43_s6, %s43_s6 }
  0x1b   :  { %p400_p10 = scmp.ne.s32.totalorder %s43_s6, %s399_s1  ;;  %p405_p12 = scmp.lt.s32.totalorder %s399_s1, %s399_s1 }
  0x1d   :  { %p406_p13 = por %p405_p12, %p404_p11 }
  0x1f   :  { %p407_p0 = pnand %p406_p13, %p400_p10 }
  0x21   :  { %410 = shalt.err (!%p407_p0)
}
  0x22   :  { %s464_s7 = smov 256   ;;  %s465_s8 = smov 16  }
  0x23   :  { %48 = dma.hbm_to_vmem [thread:$0]  %s567_s2, 1024, %s43_s6, [#allocation6], %s464_s7, %s464_s7, %s465_s8  }
  0x24   :  { %451 = dma.done.wait [#allocation3], 512  }
  0x25   :  { %452 = vsyncadd [#allocation3], 4294966784 }
  0x26   :  { %453 = dma.done.wait [#allocation6], 1056  }
  0x27   :  { %454 = vsyncadd [#allocation6], 4294966240  ;;  %v466_v0 = vmov 0.0   ;;  %vm92_vm0 = vcmask 261120   ;;  %v182_v1 = vld [vmem:[#allocation2] sm:$0xff]  ;;  %v184_v2 = vld [vmem:[#allocation2 + $0x10] sm:$0xff]  ;;  %v82_v43 = vlaneseq }
  0x28   :  { %160 = vmatprep.mubr.f32.mxu0 %v466_v0  ;;  %v183_v3 = vld [vmem:[#allocation2 + $0x8] sm:$0xff]  ;;  %v187_v4 = vsel %vm92_vm0, %v182_v1, 0.0  ;;  %v193_v5 = vsel %vm92_vm0, %v184_v2, 0.0  ;;  %v185_v6 = vld [vmem:[#allocation2 + $0x18] sm:$0xff]  ;;  %v64_v13 = vld [vmem:[#allocation5] sm:$0x3] }
  0x29   :  { %v79_v7 = vld [vmem:[#allocation7 + $0x38] sm:$0xff]  ;;  %v78_v8 = vld [vmem:[#allocation7 + $0x30] sm:$0xff]  ;;  %188 = vadd.xlane.f32.xlu0 %v187_v4  ;;  %194 = vadd.xlane.f32.xlu1 %v193_v5  ;;  %v77_v9 = vld [vmem:[#allocation7 + $0x28] sm:$0xff]  ;;  %v190_v10 = vsel %vm92_vm0, %v183_v3, 0.0  ;;  %v196_v11 = vsel %vm92_vm0, %v185_v6, 0.0  ;;  %v83_v44 = vshrl.u32 %v82_v43, 7 }
  0x2a   :  { %120 = vmatprep.subr.mxu0 %v79_v7  ;;  %v76_v12 = vld [vmem:[#allocation7 + $0x20] sm:$0xff]  ;;  %v75_v14 = vld [vmem:[#allocation7 + $0x18] sm:$0xff]  ;;  %v324_v15 = vmul.f32 -1.442695, %v64_v13  ;;  %v74_v16 = vld [vmem:[#allocation7 + $0x10] sm:$0xff]  ;;  %vm178_vm1 = vcmask 1041408  }
  0x2b   :  { %121 = vmatpush1.msra.mxu0 %v78_v8  ;;  %v73_v17 = vld [vmem:[#allocation7 + $0x8] sm:$0xff]  ;;  %v72_v18 = vld [vmem:[#allocation7] sm:$0xff]  ;;  %v467_v45 = vmov 1983009808   ;;  %v538_v47 = vsub.s32 0, %v83_v44  ;;  %v88_v48 = vsub.s32 1, %v83_v44 }
  0x2c   :  { %122 = vmatprep.subr.mxu0 %v77_v9  ;;  %339 = vpow2.f32 %v324_v15  ;;  %v171_v46 = vunpack.c.l.s4 %v467_v45  ;;  %v80_v49 = vld [vmem:[%s568_s3] sm:$0x3]  ;;  %vm179_vm2 = vcmask 519170   ;;  %s468_s11 = smov [#allocation9]  }
  0x2d   :  { %191 = vadd.xlane.f32.xlu0 %v190_v10  ;;  %197 = vadd.xlane.f32.xlu1 %v196_v11  ;;  %v85_v51 = vrot.slane %v80_v49, %v538_v47  ;;  %v89_v52 = vrot.slane %v80_v49, %v88_v48  ;;  %vm180_vm3 = vmor %vm179_vm2, %vm178_vm1  ;;  %s310_s12 = sshll.u32 %s468_s11, 4  ;;  %s311_s12 = int_to_ptr.vmem [resolvable:$true] %s310_s12 }
  0x2e   :  { %123 = vmatpush1.msra.mxu0 %v76_v12  ;;  %v172_v50 = vunpack.c.0.s8 %v171_v46  ;;  %s411_s13 = scalar_lea.vmem %s311_s12, 64  ;;  %p416_p2 = scmp.lt.s32.totalorder %s311_s12, %s311_s12 }
  0x2f   :  { %124 = vmatprep.subr.mxu0 %v75_v14  ;;  %p412_p1 = scmp.ne.s32.totalorder %s311_s12, %s411_s13  ;;  %p417_p3 = scmp.lt.s32.totalorder %s411_s13, %s411_s13 }
  0x30   :  { %125 = vmatpush1.msra.mxu0 %v74_v16  ;;  %v175_v55 = vsub.s32 %v172_v50, %v83_v44 }
  0x31   :  { %126 = vmatprep.subr.mxu0 %v73_v17  ;;  %p418_p4 = por %p417_p3, %p416_p2 }
  0x32   :  { %127 = vmatpush1.msra.mxu0 %v72_v18 }
  0x33   :  { %p419_p5 = pnand %p418_p4, %p412_p1 }
  0x39   :  { %v340_v19 = vpop.eup %339 }
  0x3a   :  { %v68_v20 = vadd.f32 1.0, %v340_v19 }
  0x3c   :  { %341 = vrcp.f32 %v68_v20 }
  0x49   :  { %v342_v21 = vpop.eup %341 }
  0x4a   :  { %v71_v22 = vmul.f32 %v342_v21, %v64_v13 }
  0x4c   :  { %325 = vmatmul.mubr.msk.f32.vlgmr.msra.gmra.mxu0 %vm92_vm0, %v71_v22 }
  0xb2   :  { %v189_v23 = vpop.xlane.xlu0 %188  ;;  %v195_v24 = vpop.xlane.xlu1 %194 }
  0xb3   :  { %v200_v25 = vmul.f32 0.03125, %v189_v23  ;;  %v202_v26 = vmul.f32 0.03125, %v195_v24 }
  0xb5   :  { %v518_v27 = vsub.f32 %v182_v1, %v200_v25  ;;  %v520_v28 = vsub.f32 %v184_v2, %v202_v26 }
  0xb6   :  { %v192_v29 = vpop.xlane.xlu0 %191  ;;  %v198_v30 = vpop.xlane.xlu1 %197 }
  0xb7   :  { %v201_v31 = vmul.f32 0.03125, %v192_v29  ;;  %v203_v32 = vmul.f32 0.03125, %v198_v30  ;;  %v208_v33 = vmul.f32 %v518_v27, %v518_v27  ;;  %v210_v34 = vmul.f32 %v520_v28, %v520_v28 }
  0xb9   :  { %v526_v35 = vsub.f32 %v183_v3, %v201_v31  ;;  %v528_v36 = vsub.f32 %v185_v6, %v203_v32  ;;  %v212_v37 = vsel %vm92_vm0, %v208_v33, 0.0  ;;  %v218_v38 = vsel %vm92_vm0, %v210_v34, 0.0 }
  0xba   :  { %213 = vadd.xlane.f32.xlu0 %v212_v37 }
  0xbb   :  { %v209_v39 = vmul.f32 %v526_v35, %v526_v35  ;;  %v211_v40 = vmul.f32 %v528_v36, %v528_v36 }
  0xbd   :  { %v215_v41 = vsel %vm92_vm0, %v209_v39, 0.0  ;;  %v221_v42 = vsel %vm92_vm0, %v211_v40, 0.0 }
  0xbe   :  { %219 = vadd.xlane.f32.xlu0 %v218_v38  ;;  %216 = vadd.xlane.f32.xlu1 %v215_v41 }
  0xc2   :  { %222 = vadd.xlane.f32.xlu1 %v221_v42 }
 0x10c   :  { %v162_v53 = vpop.f32.mrf.mxu0 }
 0x10d   :  { %v163_v56 = vadd.f32 %v162_v53, %v85_v51 }
 0x10e   :  { %v164_v54 = vpop.f32.mrf.mxu0 }
 0x10f   :  { %v165_v57 = vadd.f32 %v164_v54, %v89_v52 }
 0x111   :  { %v169_v58 = vcombine.low %v163_v56, %v165_v57 }
 0x113   :  { %v176_v59 = vrot.slane %v169_v58, %v175_v55 }
 0x115   :  { %181 = vst.msk [vmem:[#allocation9] sm:$0xf] %vm180_vm3, %v176_v59 }
 0x116   :  { %422 = shalt.err (!%p419_p5)
}
 0x117   :  { %313 = dma.vmem_to_hbm [thread:$0]  %s311_s12, 64, %s570_s5, [#allocation10]  }
 0x118   :  { %s469_s15 = smov 96   ;;  %s470_s5 = smov [#allocation8]  }
 0x119   :  { %s297_s16 = sshll.u32 %s470_s5, 4  ;;  %s298_s16 = int_to_ptr.vmem [resolvable:$true] %s297_s16 }
 0x11a   :  { %s431_s17 = scalar_lea.vmem %s298_s16, 512  ;;  %p436_p7 = scmp.lt.s32.totalorder %s298_s16, %s298_s16 }
 0x11b   :  { %p432_p6 = scmp.ne.s32.totalorder %s298_s16, %s431_s17  ;;  %p437_p8 = scmp.lt.s32.totalorder %s431_s17, %s431_s17 }
 0x11c   :  { %v326_v60 = vld.sshfl [vmem:[#allocation9] sm:$0x11 pattern:$0x75316420] }
 0x11d   :  { %v252_v61 = vadd.f32 1.0, %v326_v60  ;;  %v249_v62 = vcombine.high %v326_v60, %v326_v60  ;;  %v277_v20 = vrot.slane %v326_v60, %v538_v47  ;;  %p438_p9 = por %p437_p8, %p436_p7 }
 0x11f   :  { %v259_v63 = vrot.slane %v252_v61, %v538_v47  ;;  %v253_v0 = vadd.f32 1.0, %v249_v62  ;;  %v281_v26 = vrot.slane %v249_v62, %v538_v47  ;;  %p439_p10 = pnand %p438_p9, %p432_p6 }
 0x121   :  { %264 = vrot.lane.b32.xlu0 %v259_v63, %s469_s15  ;;  %v263_v1 = vrot.slane %v253_v0, %v538_v47 }
 0x123   :  { %266 = vrot.lane.b32.xlu1 %v263_v1, %s469_s15 }
 0x143   :  { %v214_v2 = vpop.xlane.xlu0 %213 }
 0x144   :  { %v224_v5 = vmul.f32 0.03125, %v214_v2 }
 0x146   :  { %v228_v10 = vadd.f32 1e-06, %v224_v5 }
 0x147   :  { %v217_v3 = vpop.xlane.xlu1 %216  ;;  %v220_v4 = vpop.xlane.xlu0 %219 }
 0x148   :  { %v225_v7 = vmul.f32 0.03125, %v217_v3  ;;  %v226_v8 = vmul.f32 0.03125, %v220_v4  ;;  %343 = vrsqrt.f32 %v228_v10 }
 0x14a   :  { %v229_v11 = vadd.f32 1e-06, %v225_v7  ;;  %v230_v12 = vadd.f32 1e-06, %v226_v8 }
 0x14b   :  { %v223_v6 = vpop.xlane.xlu1 %222 }
 0x14c   :  { %v227_v9 = vmul.f32 0.03125, %v223_v6  ;;  %345 = vrsqrt.f32 %v229_v11 }
 0x14d   :  { %347 = vrsqrt.f32 %v230_v12 }
 0x14e   :  { %v231_v13 = vadd.f32 1e-06, %v227_v9 }
 0x150   :  { %349 = vrsqrt.f32 %v231_v13 }
 0x155   :  { %v344_v14 = vpop.eup %343 }
 0x156   :  { %v236_v18 = vmul.f32 %v344_v14, %v518_v27 }
 0x159   :  { %v346_v15 = vpop.eup %345 }
 0x15a   :  { %v348_v16 = vpop.eup %347  ;;  %v237_v19 = vmul.f32 %v346_v15, %v526_v35 }
 0x15b   :  { %v238_v24 = vmul.f32 %v348_v16, %v520_v28 }
 0x15d   :  { %v350_v17 = vpop.eup %349 }
 0x15e   :  { %v239_v25 = vmul.f32 %v350_v17, %v528_v36 }
 0x193   :  { %v265_v21 = vpop.permute.xlu0 %264 }
 0x194   :  { %v270_v22 = vmul.f32 %v265_v21, %v236_v18  ;;  %v271_v23 = vmul.f32 %v265_v21, %v237_v19 }
 0x195   :  { %v267_v29 = vpop.permute.xlu1 %266 }
 0x196   :  { %v284_v30 = vadd.f32 %v277_v20, %v270_v22  ;;  %v285_v31 = vadd.f32 %v277_v20, %v271_v23  ;;  %v272_v32 = vmul.f32 %v267_v29, %v238_v24  ;;  %v273_v27 = vmul.f32 %v267_v29, %v239_v25 }
 0x198   :  { %288 = vst.msk [vmem:[#allocation8] sm:$0xff] %vm92_vm0, %v284_v30  ;;  %289 = vst.msk [vmem:[#allocation8 + $0x8] sm:$0xff] %vm92_vm0, %v285_v31  ;;  %v286_v33 = vadd.f32 %v281_v26, %v272_v32  ;;  %v287_v34 = vadd.f32 %v281_v26, %v273_v27 }
 0x19a   :  { %290 = vst.msk [vmem:[#allocation8 + $0x10] sm:$0xff] %vm92_vm0, %v286_v33  ;;  %291 = vst.msk [vmem:[#allocation8 + $0x18] sm:$0xff] %vm92_vm0, %v287_v34 }
 0x19b   :  { %442 = shalt.err (!%p439_p10)
}
 0x19c   :  { %303 = dma.vmem_to_hbm [thread:$0]  %s298_s16, 512, %s569_s4, [#allocation4], %s461_s26, %s461_s26, %s462_s27  }
 0x19d   :  { %455 = dma.done.wait [#allocation4], 512  }
 0x19e   :  { %456 = vsyncadd [#allocation4], 4294966784 }
 0x19f   :  { %457 = dma.done.wait [#allocation10], 64  }
 0x1a0   :  { %458 = vsyncadd [#allocation10], 4294967232 }
 0x1a1   :  { %320 = vsyncpa [#allocation3], 1 }
 0x1a2   :  { %321 = vsyncpa [#allocation6], 1 }
 0x1a3   :  { %322 = vsyncpa [#allocation4], 1 }
 0x1a4   :  { %323 = vsyncpa [#allocation10], 1 }

</bundles_post_ra>
